<compile_context>
chip_gen: v7x
topology: tpu7x:2x2x1
jax: 0.10.0
libtpu: 0.0.40
codegen_flags: <defaults>
</compile_context>

<pallas_src>
import math
from functools import partial

import jax
import jax.numpy as jnp
from jax import lax
from jax.experimental import pallas as pl
from jax.experimental.pallas import tpu as pltpu


# ---------------------------------------------------------------------------
# Math helpers (pure jnp, used both inside the kernel and in the reference).
# ---------------------------------------------------------------------------
def _artanh(x):
    # geoopt-style clamp for numerical stability before artanh.
    # TODO(synk): geoopt uses a dtype-dependent eps; 1e-7 matches f32 closely.
    x = jnp.clip(x, -1.0 + 1e-7, 1.0 - 1e-7)
    return 0.5 * jnp.log((1.0 + x) / (1.0 - x))


def _poincare_dist_from_x2(x, x2, y, c):
    """Row-wise Poincare-ball distance with a precomputed ||x||^2.

    x, y: (rows, D); x2: (rows, 1).  Returns (rows, 1) float32.
    """
    y2 = jnp.sum(y * y, axis=-1, keepdims=True)
    xy = jnp.sum(x * y, axis=-1, keepdims=True)
    # mobius_add(-x, y): narrow (rows, 1) reciprocal, then broadcast-multiply.
    denom = 1.0 - 2.0 * c * xy + (c * c) * x2 * y2
    denom = jnp.maximum(denom, 1e-15)          # geoopt clamp_min(1e-15)
    inv_denom = 1.0 / denom                    # narrow exact divide
    num = (1.0 - 2.0 * c * xy + c * y2) * (-x) + (1.0 - c * x2) * y
    ma = num * inv_denom
    ma_norm = jnp.sqrt(jnp.sum(ma * ma, axis=-1, keepdims=True))
    sqc = math.sqrt(c)
    return (2.0 / sqc) * _artanh(sqc * ma_norm)


def _poincare_dist(x, y, c):
    x2 = jnp.sum(x * x, axis=-1, keepdims=True)
    return _poincare_dist_from_x2(x, x2, y, c)


# ---------------------------------------------------------------------------
# Pallas kernel: one large row-tile per grid step, per-row hinge losses out.
# ---------------------------------------------------------------------------
def _hit_cluster_loss_kernel(a_ref, p_ref, n_ref, out_ref,
                             *, c, margin, n_valid, block_rows):
    i = pl.program_id(0)

    a = a_ref[...].astype(jnp.float32)
    p = p_ref[...].astype(jnp.float32)
    n = n_ref[...].astype(jnp.float32)

    a2 = jnp.sum(a * a, axis=-1, keepdims=True)          # shared anchor norm
    d_pos = _poincare_dist_from_x2(a, a2, p, c)          # (block_rows, 1)
    d_neg = _poincare_dist_from_x2(a, a2, n, c)          # (block_rows, 1)
    loss = jnp.maximum(d_pos - d_neg + margin, 0.0)

    # Mask rows beyond the true batch size (padded last tile contributes 0;
    # jnp.where selects, so NaN/garbage from OOB rows never leaks through).
    row = lax.broadcasted_iota(jnp.int32, (block_rows, 1), 0)
    valid = (i * block_rows + row) < n_valid
    out_ref[...] = jnp.where(valid, loss, 0.0)


def _choose_block_rows(n_rows, d, itemsize,
                       budget_bytes=30 * 1024 * 1024, cap=4096):
    """Largest row tile whose double-buffered 3-input footprint fits budget."""
    per_row = 3 * 2 * d * itemsize              # 3 inputs x 2 pipeline buffers
    br = max(8, min(cap, budget_bytes // per_row))
    br = (br // 8) * 8                           # sublane multiple
    n_pad = ((n_rows + 7) // 8) * 8
    return min(br, n_pad)


def hyperbolic_clustering_loss(rep_anchor, rep_positive, rep_negative,
                               *, c=1.0, margin=1.0, block_rows=None):
    """Mean triplet hinge loss over Poincare-ball distances (scalar f32)."""
    N, D = rep_anchor.shape
    assert rep_positive.shape == (N, D) and rep_negative.shape == (N, D)

    itemsize = jnp.dtype(rep_anchor.dtype).itemsize
    if block_rows is None:
        block_rows = _choose_block_rows(N, D, itemsize)
    block_rows = max(8, (block_rows // 8) * 8)

    num_tiles = pl.cdiv(N, block_rows)
    n_pad = num_tiles * block_rows

    kernel = partial(_hit_cluster_loss_kernel,
                     c=float(c), margin=float(margin),
                     n_valid=N, block_rows=block_rows)

    per_row = pl.pallas_call(
        kernel,
        out_shape=jax.ShapeDtypeStruct((n_pad, 1), jnp.float32),
        grid_spec=pltpu.PrefetchScalarGridSpec(
            num_scalar_prefetch=0,
            grid=(num_tiles,),
            in_specs=[
                pl.BlockSpec((block_rows, D), lambda i: (i, 0)),  # anchor
                pl.BlockSpec((block_rows, D), lambda i: (i, 0)),  # positive
                pl.BlockSpec((block_rows, D), lambda i: (i, 0)),  # negative
            ],
            out_specs=pl.BlockSpec((block_rows, 1), lambda i: (i, 0)),
        ),
        compiler_params=pltpu.CompilerParams(
            dimension_semantics=("parallel",),          # no cross-step carry
            vmem_limit_bytes=48 * 1024 * 1024,          # large tiles on v5e too
        ),
    )(rep_anchor, rep_positive, rep_negative)

    # Tiny final reduction in plain JAX (padded rows already written as 0).
    return jnp.sum(per_row) / jnp.float32(N)


# ---------------------------------------------------------------------------
# Pure-JAX reference (mirrors the PyTorch forward).
# ---------------------------------------------------------------------------
def reference_loss(a, p, n, *, c, margin):
    a = a.astype(jnp.float32)
    p = p.astype(jnp.float32)
    n = n.astype(jnp.float32)
    d_pos = _poincare_dist(a, p, c)[:, 0]
    d_neg = _poincare_dist(a, n, c)[:, 0]
    return jnp.mean(jnp.maximum(d_pos - d_neg + margin, 0.0))


if __name__ == "__main__":
    # Deterministic "module config": PoincareBall(c=1.0), margin=1.0.
    c = 1.0
    margin = 1.0

    # N deliberately not a multiple of 8 to exercise the padded-tile mask path.
    N, D = 20, 32
    key = jax.random.PRNGKey(0)
    ka, kp, kn = jax.random.split(key, 3)

    def sample_in_ball(k):
        kd, kr = jax.random.split(k)
        v = jax.random.normal(kd, (N, D), dtype=jnp.float32)
        v = v / jnp.linalg.norm(v, axis=-1, keepdims=True)
        radius = 0.8 * jax.random.uniform(kr, (N, 1), dtype=jnp.float32)
        return v * radius / math.sqrt(c)  # strictly inside the ball

    rep_anchor = sample_in_ball(ka)
    rep_positive = sample_in_ball(kp)
    rep_negative = sample_in_ball(kn)

    loss = hyperbolic_clustering_loss(rep_anchor, rep_positive, rep_negative,
                                      c=c, margin=margin)
    loss = jax.block_until_ready(loss)

    ref = reference_loss(rep_anchor, rep_positive, rep_negative,
                         c=c, margin=margin)
    assert jnp.allclose(loss, ref, atol=1e-5, rtol=1e-5), (loss, ref)
    print("KERNEL_OK")
</pallas_src>

<mosaic_0001>
module attributes {stable_mosaic.version = 11 : i64} {
  func.func @_hit_cluster_loss_kernel(%arg0: i32, %arg1: memref<24x32xf32, #tpu.memory_space<vmem>>, %arg2: memref<24x32xf32, #tpu.memory_space<vmem>>, %arg3: memref<24x32xf32, #tpu.memory_space<vmem>>, %arg4: memref<24x1xf32, #tpu.memory_space<vmem>>) attributes {dimension_semantics = [#tpu.dimension_semantics<parallel>], iteration_bounds = array<i64: 1>, scalar_prefetch = 0 : i64, scratch_operands = 0 : i64, tpu.core_type = #tpu.core_type<tc>, window_params = [{transform_indices = @transform_0, window_bounds = array<i64: 24, 32>}, {transform_indices = @transform_1, window_bounds = array<i64: 24, 32>}, {transform_indices = @transform_2, window_bounds = array<i64: 24, 32>}, {transform_indices = @transform_3, window_bounds = array<i64: 24, 1>}]} {
    %c0 = arith.constant 0 : index
    %c0_0 = arith.constant 0 : index
    %0 = vector.load %arg1[%c0, %c0_0] : memref<24x32xf32, #tpu.memory_space<vmem>>, vector<24x32xf32>
    %c0_1 = arith.constant 0 : index
    %c0_2 = arith.constant 0 : index
    %1 = vector.load %arg2[%c0_1, %c0_2] : memref<24x32xf32, #tpu.memory_space<vmem>>, vector<24x32xf32>
    %c0_3 = arith.constant 0 : index
    %c0_4 = arith.constant 0 : index
    %2 = vector.load %arg3[%c0_3, %c0_4] : memref<24x32xf32, #tpu.memory_space<vmem>>, vector<24x32xf32>
    %3 = arith.mulf %0, %0 : vector<24x32xf32>
    %cst = arith.constant dense<0.000000e+00> : vector<24xf32>
    %4 = vector.multi_reduction <add>, %3, %cst [1] : vector<24x32xf32> to vector<24xf32>
    %5 = vector.shape_cast %4 : vector<24xf32> to vector<24x1xf32>
    %6 = arith.mulf %1, %1 : vector<24x32xf32>
    %cst_5 = arith.constant dense<0.000000e+00> : vector<24xf32>
    %7 = vector.multi_reduction <add>, %6, %cst_5 [1] : vector<24x32xf32> to vector<24xf32>
    %8 = vector.shape_cast %7 : vector<24xf32> to vector<24x1xf32>
    %9 = arith.mulf %0, %1 : vector<24x32xf32>
    %cst_6 = arith.constant dense<0.000000e+00> : vector<24xf32>
    %10 = vector.multi_reduction <add>, %9, %cst_6 [1] : vector<24x32xf32> to vector<24xf32>
    %11 = vector.shape_cast %10 : vector<24xf32> to vector<24x1xf32>
    %cst_7 = arith.constant 2.000000e+00 : f32
    %12 = vector.broadcast %cst_7 : f32 to vector<24x1xf32>
    %13 = arith.mulf %12, %11 : vector<24x1xf32>
    %cst_8 = arith.constant 1.000000e+00 : f32
    %14 = vector.broadcast %cst_8 : f32 to vector<24x1xf32>
    %15 = arith.subf %14, %13 : vector<24x1xf32>
    %cst_9 = arith.constant 1.000000e+00 : f32
    %16 = vector.broadcast %cst_9 : f32 to vector<24x1xf32>
    %17 = arith.mulf %16, %5 : vector<24x1xf32>
    %18 = arith.mulf %17, %8 : vector<24x1xf32>
    %19 = arith.addf %15, %18 : vector<24x1xf32>
    %cst_10 = arith.constant 1.000000e-15 : f32
    %20 = vector.broadcast %cst_10 : f32 to vector<24x1xf32>
    %21 = arith.maximumf %19, %20 : vector<24x1xf32>
    %cst_11 = arith.constant 1.000000e+00 : f32
    %22 = vector.broadcast %cst_11 : f32 to vector<24x1xf32>
    %23 = arith.divf %22, %21 : vector<24x1xf32>
    %cst_12 = arith.constant 2.000000e+00 : f32
    %24 = vector.broadcast %cst_12 : f32 to vector<24x1xf32>
    %25 = arith.mulf %24, %11 : vector<24x1xf32>
    %cst_13 = arith.constant 1.000000e+00 : f32
    %26 = vector.broadcast %cst_13 : f32 to vector<24x1xf32>
    %27 = arith.subf %26, %25 : vector<24x1xf32>
    %cst_14 = arith.constant 1.000000e+00 : f32
    %28 = vector.broadcast %cst_14 : f32 to vector<24x1xf32>
    %29 = arith.mulf %28, %8 : vector<24x1xf32>
    %30 = arith.addf %27, %29 : vector<24x1xf32>
    %cst_15 = arith.constant 0.000000e+00 : f32
    %31 = vector.broadcast %cst_15 : f32 to vector<24x32xf32>
    %32 = arith.subf %31, %0 : vector<24x32xf32>
    %33 = vector.broadcast %30 : vector<24x1xf32> to vector<24x32xf32>
    %34 = arith.mulf %33, %32 : vector<24x32xf32>
    %cst_16 = arith.constant 1.000000e+00 : f32
    %35 = vector.broadcast %cst_16 : f32 to vector<24x1xf32>
    %36 = arith.mulf %35, %5 : vector<24x1xf32>
    %cst_17 = arith.constant 1.000000e+00 : f32
    %37 = vector.broadcast %cst_17 : f32 to vector<24x1xf32>
    %38 = arith.subf %37, %36 : vector<24x1xf32>
    %39 = vector.broadcast %38 : vector<24x1xf32> to vector<24x32xf32>
    %40 = arith.mulf %39, %1 : vector<24x32xf32>
    %41 = arith.addf %34, %40 : vector<24x32xf32>
    %42 = vector.broadcast %23 : vector<24x1xf32> to vector<24x32xf32>
    %43 = arith.mulf %41, %42 : vector<24x32xf32>
    %44 = arith.mulf %43, %43 : vector<24x32xf32>
    %cst_18 = arith.constant dense<0.000000e+00> : vector<24xf32>
    %45 = vector.multi_reduction <add>, %44, %cst_18 [1] : vector<24x32xf32> to vector<24xf32>
    %46 = vector.shape_cast %45 : vector<24xf32> to vector<24x1xf32>
    %47 = math.sqrt %46 : vector<24x1xf32>
    %cst_19 = arith.constant 1.000000e+00 : f32
    %48 = vector.broadcast %cst_19 : f32 to vector<24x1xf32>
    %49 = arith.mulf %48, %47 : vector<24x1xf32>
    %cst_20 = arith.constant -0.99999988 : f32
    %cst_21 = arith.constant 0.99999988 : f32
    %50 = vector.broadcast %cst_20 : f32 to vector<24x1xf32>
    %51 = arith.maximumf %50, %49 : vector<24x1xf32>
    %52 = vector.broadcast %cst_21 : f32 to vector<24x1xf32>
    %53 = arith.minimumf %52, %51 : vector<24x1xf32>
    %cst_22 = arith.constant 1.000000e+00 : f32
    %54 = vector.broadcast %cst_22 : f32 to vector<24x1xf32>
    %55 = arith.addf %54, %53 : vector<24x1xf32>
    %cst_23 = arith.constant 1.000000e+00 : f32
    %56 = vector.broadcast %cst_23 : f32 to vector<24x1xf32>
    %57 = arith.subf %56, %53 : vector<24x1xf32>
    %58 = arith.divf %55, %57 : vector<24x1xf32>
    %59 = math.log %58 : vector<24x1xf32>
    %cst_24 = arith.constant 5.000000e-01 : f32
    %60 = vector.broadcast %cst_24 : f32 to vector<24x1xf32>
    %61 = arith.mulf %60, %59 : vector<24x1xf32>
    %cst_25 = arith.constant 2.000000e+00 : f32
    %62 = vector.broadcast %cst_25 : f32 to vector<24x1xf32>
    %63 = arith.mulf %62, %61 : vector<24x1xf32>
    %64 = arith.mulf %2, %2 : vector<24x32xf32>
    %cst_26 = arith.constant dense<0.000000e+00> : vector<24xf32>
    %65 = vector.multi_reduction <add>, %64, %cst_26 [1] : vector<24x32xf32> to vector<24xf32>
    %66 = vector.shape_cast %65 : vector<24xf32> to vector<24x1xf32>
    %67 = arith.mulf %0, %2 : vector<24x32xf32>
    %cst_27 = arith.constant dense<0.000000e+00> : vector<24xf32>
    %68 = vector.multi_reduction <add>, %67, %cst_27 [1] : vector<24x32xf32> to vector<24xf32>
    %69 = vector.shape_cast %68 : vector<24xf32> to vector<24x1xf32>
    %cst_28 = arith.constant 2.000000e+00 : f32
    %70 = vector.broadcast %cst_28 : f32 to vector<24x1xf32>
    %71 = arith.mulf %70, %69 : vector<24x1xf32>
    %cst_29 = arith.constant 1.000000e+00 : f32
    %72 = vector.broadcast %cst_29 : f32 to vector<24x1xf32>
    %73 = arith.subf %72, %71 : vector<24x1xf32>
    %cst_30 = arith.constant 1.000000e+00 : f32
    %74 = vector.broadcast %cst_30 : f32 to vector<24x1xf32>
    %75 = arith.mulf %74, %5 : vector<24x1xf32>
    %76 = arith.mulf %75, %66 : vector<24x1xf32>
    %77 = arith.addf %73, %76 : vector<24x1xf32>
    %cst_31 = arith.constant 1.000000e-15 : f32
    %78 = vector.broadcast %cst_31 : f32 to vector<24x1xf32>
    %79 = arith.maximumf %77, %78 : vector<24x1xf32>
    %cst_32 = arith.constant 1.000000e+00 : f32
    %80 = vector.broadcast %cst_32 : f32 to vector<24x1xf32>
    %81 = arith.divf %80, %79 : vector<24x1xf32>
    %cst_33 = arith.constant 2.000000e+00 : f32
    %82 = vector.broadcast %cst_33 : f32 to vector<24x1xf32>
    %83 = arith.mulf %82, %69 : vector<24x1xf32>
    %cst_34 = arith.constant 1.000000e+00 : f32
    %84 = vector.broadcast %cst_34 : f32 to vector<24x1xf32>
    %85 = arith.subf %84, %83 : vector<24x1xf32>
    %cst_35 = arith.constant 1.000000e+00 : f32
    %86 = vector.broadcast %cst_35 : f32 to vector<24x1xf32>
    %87 = arith.mulf %86, %66 : vector<24x1xf32>
    %88 = arith.addf %85, %87 : vector<24x1xf32>
    %cst_36 = arith.constant 0.000000e+00 : f32
    %89 = vector.broadcast %cst_36 : f32 to vector<24x32xf32>
    %90 = arith.subf %89, %0 : vector<24x32xf32>
    %91 = vector.broadcast %88 : vector<24x1xf32> to vector<24x32xf32>
    %92 = arith.mulf %91, %90 : vector<24x32xf32>
    %cst_37 = arith.constant 1.000000e+00 : f32
    %93 = vector.broadcast %cst_37 : f32 to vector<24x1xf32>
    %94 = arith.mulf %93, %5 : vector<24x1xf32>
    %cst_38 = arith.constant 1.000000e+00 : f32
    %95 = vector.broadcast %cst_38 : f32 to vector<24x1xf32>
    %96 = arith.subf %95, %94 : vector<24x1xf32>
    %97 = vector.broadcast %96 : vector<24x1xf32> to vector<24x32xf32>
    %98 = arith.mulf %97, %2 : vector<24x32xf32>
    %99 = arith.addf %92, %98 : vector<24x32xf32>
    %100 = vector.broadcast %81 : vector<24x1xf32> to vector<24x32xf32>
    %101 = arith.mulf %99, %100 : vector<24x32xf32>
    %102 = arith.mulf %101, %101 : vector<24x32xf32>
    %cst_39 = arith.constant dense<0.000000e+00> : vector<24xf32>
    %103 = vector.multi_reduction <add>, %102, %cst_39 [1] : vector<24x32xf32> to vector<24xf32>
    %104 = vector.shape_cast %103 : vector<24xf32> to vector<24x1xf32>
    %105 = math.sqrt %104 : vector<24x1xf32>
    %cst_40 = arith.constant 1.000000e+00 : f32
    %106 = vector.broadcast %cst_40 : f32 to vector<24x1xf32>
    %107 = arith.mulf %106, %105 : vector<24x1xf32>
    %cst_41 = arith.constant -0.99999988 : f32
    %cst_42 = arith.constant 0.99999988 : f32
    %108 = vector.broadcast %cst_41 : f32 to vector<24x1xf32>
    %109 = arith.maximumf %108, %107 : vector<24x1xf32>
    %110 = vector.broadcast %cst_42 : f32 to vector<24x1xf32>
    %111 = arith.minimumf %110, %109 : vector<24x1xf32>
    %cst_43 = arith.constant 1.000000e+00 : f32
    %112 = vector.broadcast %cst_43 : f32 to vector<24x1xf32>
    %113 = arith.addf %112, %111 : vector<24x1xf32>
    %cst_44 = arith.constant 1.000000e+00 : f32
    %114 = vector.broadcast %cst_44 : f32 to vector<24x1xf32>
    %115 = arith.subf %114, %111 : vector<24x1xf32>
    %116 = arith.divf %113, %115 : vector<24x1xf32>
    %117 = math.log %116 : vector<24x1xf32>
    %cst_45 = arith.constant 5.000000e-01 : f32
    %118 = vector.broadcast %cst_45 : f32 to vector<24x1xf32>
    %119 = arith.mulf %118, %117 : vector<24x1xf32>
    %cst_46 = arith.constant 2.000000e+00 : f32
    %120 = vector.broadcast %cst_46 : f32 to vector<24x1xf32>
    %121 = arith.mulf %120, %119 : vector<24x1xf32>
    %122 = arith.subf %63, %121 : vector<24x1xf32>
    %cst_47 = arith.constant 1.000000e+00 : f32
    %123 = vector.broadcast %cst_47 : f32 to vector<24x1xf32>
    %124 = arith.addf %122, %123 : vector<24x1xf32>
    %cst_48 = arith.constant 0.000000e+00 : f32
    %125 = vector.broadcast %cst_48 : f32 to vector<24x1xf32>
    %126 = arith.maximumf %124, %125 : vector<24x1xf32>
    %127 = tpu.iota {dimensions = array<i32: 0>} : vector<24x1xi32>
    %c24_i32 = arith.constant 24 : i32
    %128 = arith.muli %arg0, %c24_i32 : i32
    %129 = vector.broadcast %128 : i32 to vector<24x1xi32>
    %130 = arith.addi %129, %127 : vector<24x1xi32>
    %c20_i32 = arith.constant 20 : i32
    %131 = vector.broadcast %c20_i32 : i32 to vector<24x1xi32>
    %132 = arith.cmpi slt, %130, %131 : vector<24x1xi32>
    %cst_49 = arith.constant 0.000000e+00 : f32
    %133 = vector.broadcast %cst_49 : f32 to vector<24x1xf32>
    %134 = arith.select %132, %126, %133 : vector<24x1xi1>, vector<24x1xf32>
    %c0_50 = arith.constant 0 : index
    %c0_51 = arith.constant 0 : index
    %135 = vector.load %arg4[%c0_50, %c0_51] : memref<24x1xf32, #tpu.memory_space<vmem>>, vector<24x1xf32>
    tpu.vector_store %arg4[%c0_50, %c0_51], %134 {strides = array<i32>} : memref<24x1xf32, #tpu.memory_space<vmem>>, vector<24x1xf32>,
    return
  }
  func.func @transform_0(%arg0: i32) -> (i32, i32) {
    %c0_i32 = arith.constant 0 : i32
    %c0_i32_0 = arith.constant 0 : i32
    return %arg0, %c0_i32 : i32, i32
  }
  func.func @transform_1(%arg0: i32) -> (i32, i32) {
    %c0_i32 = arith.constant 0 : i32
    %c0_i32_0 = arith.constant 0 : i32
    return %arg0, %c0_i32 : i32, i32
  }
  func.func @transform_2(%arg0: i32) -> (i32, i32) {
    %c0_i32 = arith.constant 0 : i32
    %c0_i32_0 = arith.constant 0 : i32
    return %arg0, %c0_i32 : i32, i32
  }
  func.func @transform_3(%arg0: i32) -> (i32, i32) {
    %c0_i32 = arith.constant 0 : i32
    %c0_i32_0 = arith.constant 0 : i32
    return %arg0, %c0_i32 : i32, i32
  }
}

</mosaic_0001>

<bundles_post_ra>
// kernel: tpu_custom_call.1
= control target key start
LH: loop header
LB: loop body
LE: loop exit
PB: predicated region body
PF: predicated region fallthrough
CT: control target
= control target key end

     0   :  { %8 = vsyncpa [#allocation3], 0  ;;  %s669_s0 = inlined_call_operand.hbm [shape: f32[20,32], index: 0, kind: input, shape index: {}]   ;;  %s670_s1 = inlined_call_operand.hbm [shape: f32[20,32], index: 1, kind: input, shape index: {}]   ;;  %s671_s2 = inlined_call_operand.hbm [shape: f32[20,32], index: 2, kind: input, shape index: {}]   ;;  %s672_s3 = inlined_call_operand.vmem [shape: f32[24,1], index: 3, kind: output, shape index: {}]  }
   0x1   :  { %9 = vsyncpa [#allocation5], 0  ;;  %s492_s12 = smov [#allocation4]   ;;  %s493_s14 = smov [#allocation2]  }
   0x2   :  { %s27_s13 = sshll.u32 %s492_s12, 4  ;;  %s15_s15 = sshll.u32 %s493_s14, 4  ;;  %s28_s13 = int_to_ptr.vmem [resolvable:$true] %s27_s13  ;;  %s517_s15 = int_to_ptr.vmem [resolvable:$true] %s15_s15 }
   0x3   :  { %s422_s18 = scalar_lea.hbm %s670_s1, 384 }
   0x4   :  { %p423_p0 = scmp.ne.s32.totalorder %s670_s1, %s422_s18  ;;  %p426_p1 = scmp.lt.u32.totalorder %s422_s18, %s670_s1 }
   0x6   :  { %p428_p2 = pnand %p426_p1, %p423_p0 }
   0x8   :  { %431 = shalt.err (!%p428_p2)
}
   0x9   :  { %s432_s23 = scalar_lea.vmem %s28_s13, 384  ;;  %p437_p4 = scmp.lt.s32.totalorder %s28_s13, %s28_s13 }
   0xa   :  { %p433_p3 = scmp.ne.s32.totalorder %s28_s13, %s432_s23  ;;  %p438_p5 = scmp.lt.s32.totalorder %s432_s23, %s432_s23 }
   0xc   :  { %p439_p6 = por %p438_p5, %p437_p4 }
   0xe   :  { %p440_p7 = pnand %p439_p6, %p433_p3 }
  0x10   :  { %443 = shalt.err (!%p440_p7)
}
  0x11   :  { %s494_s24 = smov 128   ;;  %s495_s25 = smov 8  }
  0x12   :  { %33 = dma.hbm_to_vmem [thread:$0]  %s670_s1, 384, %s28_s13, [#allocation5], %s494_s24, %s494_s24, %s495_s25  }
  0x13   :  { %s444_s30 = scalar_lea.hbm %s669_s0, 384 }
  0x14   :  { %p445_p8 = scmp.ne.s32.totalorder %s669_s0, %s444_s30  ;;  %p448_p9 = scmp.lt.u32.totalorder %s444_s30, %s669_s0 }
  0x16   :  { %p450_p10 = pnand %p448_p9, %p445_p8 }
  0x18   :  { %453 = shalt.err (!%p450_p10)
}
  0x19   :  { %s454_s8 = scalar_lea.vmem %s517_s15, 384  ;;  %p459_p12 = scmp.lt.s32.totalorder %s517_s15, %s517_s15 }
  0x1a   :  { %p455_p11 = scmp.ne.s32.totalorder %s517_s15, %s454_s8  ;;  %p460_p13 = scmp.lt.s32.totalorder %s454_s8, %s454_s8 }
  0x1c   :  { %p461_p0 = por %p460_p13, %p459_p12 }
  0x1e   :  { %p462_p1 = pnand %p461_p0, %p455_p11 }
  0x20   :  { %465 = shalt.err (!%p462_p1)
}
  0x21   :  { %21 = dma.hbm_to_vmem [thread:$0]  %s669_s0, 384, %s517_s15, [#allocation3], %s494_s24, %s494_s24, %s495_s25  }
  0x22   :  { %s496_s10 = smov [#allocation6]   ;;  %s466_s14 = scalar_lea.hbm %s671_s2, 384 }
  0x23   :  { %s39_s11 = sshll.u32 %s496_s10, 4  ;;  %p467_p2 = scmp.ne.s32.totalorder %s671_s2, %s466_s14  ;;  %s40_s11 = int_to_ptr.vmem [resolvable:$true] %s39_s11 }
  0x24   :  { %p470_p3 = scmp.lt.u32.totalorder %s466_s14, %s671_s2 }
  0x26   :  { %p472_p4 = pnand %p470_p3, %p467_p2 }
  0x28   :  { %475 = shalt.err (!%p472_p4)
}
  0x29   :  { %s476_s20 = scalar_lea.vmem %s40_s11, 384  ;;  %p481_p6 = scmp.lt.s32.totalorder %s40_s11, %s40_s11 }
  0x2a   :  { %p477_p5 = scmp.ne.s32.totalorder %s40_s11, %s476_s20  ;;  %p482_p7 = scmp.lt.s32.totalorder %s476_s20, %s476_s20 }
  0x2c   :  { %p483_p8 = por %p482_p7, %p481_p6 }
  0x2e   :  { %p484_p9 = pnand %p483_p8, %p477_p5 }
  0x30   :  { %487 = shalt.err (!%p484_p9)
}
  0x31   :  { %45 = dma.hbm_to_vmem [thread:$0]  %s671_s2, 384, %s40_s11, [#allocation5], %s494_s24, %s494_s24, %s495_s25  }
  0x32   :  { %488 = dma.done.wait [#allocation3], 384  }
  0x33   :  { %489 = vsyncadd [#allocation3], 4294966912 }
  0x34   :  { %490 = dma.done.wait [#allocation5], 768  }
  0x35   :  { %491 = vsyncadd [#allocation5], 4294966528  ;;  %v569_v0 = vld [vmem:[#allocation2 + $0x10] sm:$0xff]  ;;  %v571_v1 = vld [vmem:[#allocation4 + $0x10] sm:$0xff]  ;;  %vm67_vm0 = vcmask 261120   ;;  %vm353_vm14 = vcmask 7168  }
  0x36   :  { %v573_v2 = vld [vmem:[#allocation2] sm:$0xff]  ;;  %v91_v3 = vmul.f32 %v571_v1, %v569_v0  ;;  %v577_v4 = vld [vmem:[#allocation4] sm:$0xff]  ;;  %v581_v6 = vld [vmem:[#allocation2 + $0x8] sm:$0xff]  ;;  %v66_v20 = vmul.f32 %v569_v0, %v569_v0  ;;  %v79_v22 = vmul.f32 %v571_v1, %v571_v1  ;;  %v127_v59 = vsub.f32 0.0, %v569_v0 }
  0x37   :  { %v579_v5 = vld [vmem:[#allocation6 + $0x10] sm:$0xff]  ;;  %v89_v7 = vmul.f32 %v577_v4, %v573_v2  ;;  %v589_v10 = vld [vmem:[#allocation6] sm:$0xff]  ;;  %v594_v13 = vld [vmem:[#allocation6 + $0x8] sm:$0xff]  ;;  %v64_v26 = vmul.f32 %v573_v2, %v573_v2  ;;  %v65_v28 = vmul.f32 %v581_v6, %v581_v6  ;;  %v77_v30 = vmul.f32 %v577_v4, %v577_v4 }
  0x38   :  { %v220_v8 = vmul.f32 %v579_v5, %v569_v0  ;;  %v587_v9 = vld [vmem:[#allocation4 + $0x8] sm:$0xff]  ;;  %v98_v11 = vsel %vm67_vm0, %v91_v3, 0.0  ;;  %v218_v16 = vmul.f32 %v589_v10, %v573_v2  ;;  %v219_v18 = vmul.f32 %v594_v13, %v581_v6 }
  0x39   :  { %v90_v12 = vmul.f32 %v587_v9, %v581_v6  ;;  %99 = vadd.xlane.f32.xlu0 %v98_v11  ;;  %v92_v14 = vsel %vm67_vm0, %v89_v7, 0.0  ;;  %v74_v23 = vsel %vm67_vm0, %v66_v20, 0.0  ;;  %v208_v24 = vmul.f32 %v579_v5, %v579_v5 }
  0x3a   :  { %93 = vadd.xlane.f32.xlu1 %v92_v14  ;;  %v227_v15 = vsel %vm67_vm0, %v220_v8, 0.0  ;;  %v221_v19 = vsel %vm67_vm0, %v218_v16, 0.0  ;;  %v224_v21 = vsel %vm67_vm0, %v219_v18, 0.0  ;;  %v86_v25 = vsel %vm67_vm0, %v79_v22, 0.0 }
  0x3b   :  { %v95_v17 = vsel %vm67_vm0, %v90_v12, 0.0  ;;  %v215_v27 = vsel %vm67_vm0, %v208_v24, 0.0  ;;  %v68_v29 = vsel %vm67_vm0, %v64_v26, 0.0  ;;  %v71_v31 = vsel %vm67_vm0, %v65_v28, 0.0 }
  0x3c   :  { %v78_v32 = vmul.f32 %v587_v9, %v587_v9  ;;  %v80_v33 = vsel %vm67_vm0, %v77_v30, 0.0  ;;  %v206_v34 = vmul.f32 %v589_v10, %v589_v10  ;;  %v207_v36 = vmul.f32 %v594_v13, %v594_v13 }
  0x3d   :  { %228 = vadd.xlane.f32.xlu0 %v227_v15  ;;  %v125_v26 = vsub.f32 0.0, %v573_v2 }
  0x3e   :  { %96 = vadd.xlane.f32.xlu1 %v95_v17  ;;  %v83_v35 = vsel %vm67_vm0, %v78_v32, 0.0  ;;  %v209_v37 = vsel %vm67_vm0, %v206_v34, 0.0  ;;  %v212_v38 = vsel %vm67_vm0, %v207_v36, 0.0 }
  0x41   :  { %222 = vadd.xlane.f32.xlu0 %v221_v19 }
  0x42   :  { %225 = vadd.xlane.f32.xlu1 %v224_v21 }
  0x45   :  { %75 = vadd.xlane.f32.xlu0 %v74_v23 }
  0x46   :  { %87 = vadd.xlane.f32.xlu1 %v86_v25 }
  0x49   :  { %216 = vadd.xlane.f32.xlu0 %v215_v27 }
  0x4a   :  { %69 = vadd.xlane.f32.xlu1 %v68_v29 }
  0x4d   :  { %72 = vadd.xlane.f32.xlu0 %v71_v31 }
  0x4e   :  { %81 = vadd.xlane.f32.xlu1 %v80_v33 }
  0x51   :  { %84 = vadd.xlane.f32.xlu0 %v83_v35 }
  0x52   :  { %210 = vadd.xlane.f32.xlu1 %v209_v37 }
  0x55   :  { %213 = vadd.xlane.f32.xlu0 %v212_v38  ;;  %v126_v38 = vsub.f32 0.0, %v581_v6 }
  0xc6   :  { %v100_v39 = vpop.xlane.xlu0 %99 }
  0xc7   :  { %v94_v40 = vpop.xlane.xlu1 %93  ;;  %v103_v45 = vmul.f32 2.0, %v100_v39 }
  0xc8   :  { %v101_v56 = vmul.f32 2.0, %v94_v40 }
  0xc9   :  { %v106_v49 = vsub.f32 1.0, %v103_v45 }
  0xca   :  { %v229_v41 = vpop.xlane.xlu0 %228  ;;  %v104_v8 = vsub.f32 1.0, %v101_v56 }
  0xcb   :  { %v97_v42 = vpop.xlane.xlu1 %96  ;;  %v232_v47 = vmul.f32 2.0, %v229_v41 }
  0xcc   :  { %v102_v61 = vmul.f32 2.0, %v97_v42 }
  0xcd   :  { %v235_v53 = vsub.f32 1.0, %v232_v47 }
  0xce   :  { %v223_v43 = vpop.xlane.xlu0 %222  ;;  %v105_v18 = vsub.f32 1.0, %v102_v61 }
  0xcf   :  { %v226_v44 = vpop.xlane.xlu1 %225  ;;  %v230_v11 = vmul.f32 2.0, %v223_v43 }
  0xd0   :  { %v231_v14 = vmul.f32 2.0, %v226_v44 }
  0xd1   :  { %v233_v22 = vsub.f32 1.0, %v230_v11 }
  0xd2   :  { %v76_v46 = vpop.xlane.xlu0 %75  ;;  %v234_v25 = vsub.f32 1.0, %v231_v14 }
  0xd3   :  { %v88_v48 = vpop.xlane.xlu1 %87  ;;  %v133_v62 = vsub.f32 1.0, %v76_v46 }
  0xd4   :  { %v109_v50 = vmul.f32 %v88_v48, %v76_v46  ;;  %v124_v63 = vadd.f32 %v106_v49, %v88_v48 }
  0xd5   :  { %v136_v0 = vmul.f32 %v133_v62, %v571_v1  ;;  %v259_v36 = vmul.f32 %v133_v62, %v579_v5 }
  0xd6   :  { %v112_v51 = vadd.f32 %v109_v50, %v106_v49  ;;  %v217_v52 = vpop.xlane.xlu0 %216  ;;  %v130_v19 = vmul.f32 %v127_v59, %v124_v63 }
  0xd7   :  { %v238_v54 = vmul.f32 %v217_v52, %v76_v46  ;;  %v632_v55 = vpop.xlane.xlu1 %69  ;;  %v253_v15 = vadd.f32 %v235_v53, %v217_v52 }
  0xd8   :  { %v115_v57 = vmax.f32 %v112_v51, 1e-15  ;;  %v131_v29 = vsub.f32 1.0, %v632_v55  ;;  %v139_v34 = vadd.f32 %v136_v0, %v130_v19 }
  0xd9   :  { %v241_v58 = vadd.f32 %v238_v54, %v235_v53  ;;  %v256_v28 = vmul.f32 %v253_v15, %v127_v59 }
  0xda   :  { %374 = vrcp.f32 %v115_v57  ;;  %v635_v60 = vpop.xlane.xlu0 %72  ;;  %v134_v40 = vmul.f32 %v131_v29, %v577_v4  ;;  %v257_v56 = vmul.f32 %v131_v29, %v589_v10 }
  0xdb   :  { %v244_v3 = vmax.f32 %v241_v58, 1e-15  ;;  %v82_v7 = vpop.xlane.xlu1 %81  ;;  %v262_v42 = vadd.f32 %v259_v36, %v256_v28  ;;  %v132_v48 = vsub.f32 1.0, %v635_v60 }
  0xdc   :  { %v107_v12 = vmul.f32 %v82_v7, %v632_v55  ;;  %v122_v32 = vadd.f32 %v104_v8, %v82_v7 }
  0xdd   :  { %376 = vrcp.f32 %v244_v3  ;;  %v135_v54 = vmul.f32 %v132_v48, %v587_v9  ;;  %v258_v3 = vmul.f32 %v132_v48, %v594_v13 }
  0xde   :  { %v110_v16 = vadd.f32 %v107_v12, %v104_v8  ;;  %v85_v17 = vpop.xlane.xlu0 %84  ;;  %v128_v44 = vmul.f32 %v125_v26, %v122_v32 }
  0xdf   :  { %v108_v20 = vmul.f32 %v85_v17, %v635_v60  ;;  %v211_v21 = vpop.xlane.xlu1 %210  ;;  %v123_v41 = vadd.f32 %v105_v18, %v85_v17 }
  0xe0   :  { %v113_v23 = vmax.f32 %v110_v16, 1e-15  ;;  %v236_v24 = vmul.f32 %v211_v21, %v632_v55  ;;  %v251_v45 = vadd.f32 %v233_v22, %v211_v21  ;;  %v137_v4 = vadd.f32 %v134_v40, %v128_v44 }
  0xe1   :  { %v111_v27 = vadd.f32 %v108_v20, %v105_v18  ;;  %v129_v6 = vmul.f32 %v126_v38, %v123_v41 }
  0xe2   :  { %378 = vrcp.f32 %v113_v23  ;;  %v239_v30 = vadd.f32 %v236_v24, %v233_v22  ;;  %v214_v31 = vpop.xlane.xlu0 %213  ;;  %v254_v52 = vmul.f32 %v251_v45, %v125_v26 }
  0xe3   :  { %v114_v1 = vmax.f32 %v111_v27, 1e-15  ;;  %v237_v33 = vmul.f32 %v214_v31, %v635_v60  ;;  %v252_v50 = vadd.f32 %v234_v25, %v214_v31  ;;  %v138_v59 = vadd.f32 %v135_v54, %v129_v6 }
  0xe4   :  { %v375_v35 = vpop.eup %374  ;;  %v242_v37 = vmax.f32 %v239_v30, 1e-15  ;;  %v260_v62 = vadd.f32 %v257_v56, %v254_v52 }
  0xe5   :  { %380 = vrcp.f32 %v114_v1  ;;  %v240_v2 = vadd.f32 %v237_v33, %v234_v25  ;;  %v142_v39 = vmul.f32 %v375_v35, %v139_v34  ;;  %v255_v58 = vmul.f32 %v252_v50, %v126_v38 }
  0xe6   :  { %382 = vrcp.f32 %v242_v37 }
  0xe7   :  { %v377_v43 = vpop.eup %376  ;;  %v243_v46 = vmax.f32 %v240_v2, 1e-15  ;;  %v145_v47 = vmul.f32 %v142_v39, %v142_v39  ;;  %v261_v12 = vadd.f32 %v258_v3, %v255_v58 }
  0xe8   :  { %v265_v49 = vmul.f32 %v377_v43, %v262_v42 }
  0xe9   :  { %384 = vrcp.f32 %v243_v46  ;;  %v152_v5 = vsel %vm67_vm0, %v145_v47, 0.0 }
  0xea   :  { %153 = vadd.xlane.f32.xlu1 %v152_v5  ;;  %v268_v51 = vmul.f32 %v265_v49, %v265_v49 }
  0xec   :  { %v379_v53 = vpop.eup %378  ;;  %v275_v55 = vsel %vm67_vm0, %v268_v51, 0.0 }
  0xed   :  { %276 = vadd.xlane.f32.xlu0 %v275_v55  ;;  %v140_v57 = vmul.f32 %v379_v53, %v137_v4 }
  0xef   :  { %v381_v60 = vpop.eup %380  ;;  %v143_v61 = vmul.f32 %v140_v57, %v140_v57 }
  0xf0   :  { %v383_v63 = vpop.eup %382  ;;  %v141_v7 = vmul.f32 %v381_v60, %v138_v59 }
  0xf1   :  { %v146_v8 = vsel %vm67_vm0, %v143_v61, 0.0  ;;  %v263_v11 = vmul.f32 %v383_v63, %v260_v62 }
  0xf2   :  { %147 = vadd.xlane.f32.xlu1 %v146_v8  ;;  %v144_v9 = vmul.f32 %v141_v7, %v141_v7 }
  0xf3   :  { %v385_v14 = vpop.eup %384  ;;  %v266_v15 = vmul.f32 %v263_v11, %v263_v11 }
  0xf4   :  { %v149_v10 = vsel %vm67_vm0, %v144_v9, 0.0  ;;  %v264_v16 = vmul.f32 %v385_v14, %v261_v12 }
  0xf5   :  { %150 = vadd.xlane.f32.xlu0 %v149_v10  ;;  %v269_v17 = vsel %vm67_vm0, %v266_v15, 0.0 }
  0xf6   :  { %270 = vadd.xlane.f32.xlu1 %v269_v17  ;;  %v267_v18 = vmul.f32 %v264_v16, %v264_v16 }
  0xf8   :  { %v272_v0 = vsel %vm67_vm0, %v267_v18, 0.0 }
  0xf9   :  { %273 = vadd.xlane.f32.xlu0 %v272_v0 }
 0x177   :  { %v154_v13 = vpop.xlane.xlu1 %153 }
 0x178   :  { %386 = vrsqrt.f32 %v154_v13  ;;  %vm171_vm1 = vcmp.eq.f32.partialorder %v154_v13, inf  ;;  %v174_v25 = vand.u32 2147483648, %v154_v13  ;;  %vm173_vm2 = vcmp.eq.f32.partialorder %v154_v13, 0.0 }
 0x17a   :  { %v277_v19 = vpop.xlane.xlu0 %276 }
 0x17b   :  { %388 = vrsqrt.f32 %v277_v19  ;;  %vm294_vm3 = vcmp.eq.f32.partialorder %v277_v19, inf  ;;  %v297_v32 = vand.u32 2147483648, %v277_v19  ;;  %vm296_vm4 = vcmp.eq.f32.partialorder %v277_v19, 0.0 }
 0x17f   :  { %v148_v20 = vpop.xlane.xlu1 %147 }
 0x180   :  { %390 = vrsqrt.f32 %v148_v20  ;;  %vm157_vm5 = vcmp.eq.f32.partialorder %v148_v20, inf  ;;  %v160_v2 = vand.u32 2147483648, %v148_v20  ;;  %vm159_vm6 = vcmp.eq.f32.partialorder %v148_v20, 0.0 }
 0x182   :  { %v387_v21 = vpop.eup %386  ;;  %v151_v22 = vpop.xlane.xlu0 %150 }
 0x183   :  { %v170_v23 = vmul.f32 %v387_v21, %v154_v13  ;;  %392 = vrsqrt.f32 %v151_v22  ;;  %v271_v24 = vpop.xlane.xlu1 %270  ;;  %vm164_vm7 = vcmp.eq.f32.partialorder %v151_v22, inf  ;;  %v167_v45 = vand.u32 2147483648, %v151_v22 }
 0x184   :  { %394 = vrsqrt.f32 %v271_v24  ;;  %vm166_vm8 = vcmp.eq.f32.partialorder %v151_v22, 0.0  ;;  %vm280_vm9 = vcmp.eq.f32.partialorder %v271_v24, inf  ;;  %v283_v48 = vand.u32 2147483648, %v271_v24 }
 0x185   :  { %v389_v26 = vpop.eup %388  ;;  %v172_v27 = vsel %vm171_vm1, %v154_v13, %v170_v23  ;;  %vm282_vm10 = vcmp.eq.f32.partialorder %v271_v24, 0.0 }
 0x186   :  { %v175_v28 = vsel %vm173_vm2, %v174_v25, %v172_v27  ;;  %v293_v29 = vmul.f32 %v389_v26, %v277_v19  ;;  %v274_v30 = vpop.xlane.xlu0 %273 }
 0x187   :  { %v365_v31 = vclamps-f32 %v175_v28, 0.9999999  ;;  %396 = vrsqrt.f32 %v274_v30  ;;  %vm287_vm11 = vcmp.eq.f32.partialorder %v274_v30, inf  ;;  %v290_v54 = vand.u32 2147483648, %v274_v30 }
 0x188   :  { %v295_v1 = vsel %vm294_vm3, %v277_v19, %v293_v29  ;;  %vm289_vm12 = vcmp.eq.f32.partialorder %v274_v30, 0.0  ;;  %v338_v19 = vlaneseq }
 0x189   :  { %v187_v33 = vsub.f32 1.0, %v365_v31  ;;  %v298_v34 = vsel %vm296_vm4, %v297_v32, %v295_v1  ;;  %v184_v55 = vadd.f32 1.0, %v365_v31 }
 0x18a   :  { %v391_v35 = vpop.eup %390  ;;  %v368_v36 = vclamps-f32 %v298_v34, 0.9999999  ;;  %v339_v26 = vshrl.u32 %v338_v19, 7 }
 0x18b   :  { %398 = vrcp.f32 %v187_v33  ;;  %v156_v37 = vmul.f32 %v391_v35, %v148_v20 }
 0x18c   :  { %v310_v38 = vsub.f32 1.0, %v368_v36  ;;  %v307_v63 = vadd.f32 1.0, %v368_v36  ;;  %v341_v31 = vadd.s32 16, %v339_v26 }
 0x18d   :  { %v393_v39 = vpop.eup %392  ;;  %v158_v40 = vsel %vm157_vm5, %v148_v20, %v156_v37 }
 0x18e   :  { %v395_v41 = vpop.eup %394  ;;  %400 = vrcp.f32 %v310_v38  ;;  %v161_v42 = vsel %vm159_vm6, %v160_v2, %v158_v40  ;;  %v163_v43 = vmul.f32 %v393_v39, %v151_v22  ;;  %vm349_vm13 = vcmp.lt.s32.totalorder %v341_v31, 20 }
 0x18f   :  { %v363_v44 = vclamps-f32 %v161_v42, 0.9999999  ;;  %v279_v46 = vmul.f32 %v395_v41, %v271_v24 }
 0x190   :  { %v165_v47 = vsel %vm164_vm7, %v151_v22, %v163_v43 }
 0x191   :  { %v397_v49 = vpop.eup %396  ;;  %v185_v5 = vsub.f32 1.0, %v363_v44  ;;  %v168_v6 = vsel %vm166_vm8, %v167_v45, %v165_v47  ;;  %v281_v50 = vsel %vm280_vm9, %v271_v24, %v279_v46  ;;  %v182_v11 = vadd.f32 1.0, %v363_v44 }
 0x192   :  { %v364_v51 = vclamps-f32 %v168_v6, 0.9999999  ;;  %v284_v52 = vsel %vm282_vm10, %v283_v48, %v281_v50  ;;  %v286_v4 = vmul.f32 %v397_v49, %v274_v30 }
 0x193   :  { %402 = vrcp.f32 %v185_v5  ;;  %v366_v53 = vclamps-f32 %v284_v52, 0.9999999 }
 0x194   :  { %v186_v56 = vsub.f32 1.0, %v364_v51  ;;  %v288_v57 = vsel %vm287_vm11, %v274_v30, %v286_v4  ;;  %v183_v14 = vadd.f32 1.0, %v364_v51 }
 0x195   :  { %v399_v58 = vpop.eup %398  ;;  %v308_v59 = vsub.f32 1.0, %v366_v53  ;;  %v291_v60 = vsel %vm289_vm12, %v290_v54, %v288_v57  ;;  %v305_v10 = vadd.f32 1.0, %v366_v53 }
 0x196   :  { %v193_v61 = vmul.f32 %v399_v58, %v184_v55  ;;  %404 = vrcp.f32 %v186_v56  ;;  %v367_v62 = vclamps-f32 %v291_v60, 0.9999999 }
 0x197   :  { %406 = vrcp.f32 %v308_v59 }
 0x198   :  { %v401_v3 = vpop.eup %400  ;;  %408 = vlog2.f32 %v193_v61  ;;  %v309_v7 = vsub.f32 1.0, %v367_v62  ;;  %v306_v20 = vadd.f32 1.0, %v367_v62 }
 0x199   :  { %v316_v8 = vmul.f32 %v401_v3, %v307_v63 }
 0x19a   :  { %410 = vrcp.f32 %v309_v7 }
 0x19b   :  { %412 = vlog2.f32 %v316_v8 }
 0x19d   :  { %v403_v9 = vpop.eup %402 }
 0x19e   :  { %v189_v12 = vmul.f32 %v403_v9, %v182_v11 }
 0x1a0   :  { %v405_v15 = vpop.eup %404  ;;  %414 = vlog2.f32 %v189_v12 }
 0x1a1   :  { %v407_v16 = vpop.eup %406  ;;  %v191_v17 = vmul.f32 %v405_v15, %v183_v14 }
 0x1a2   :  { %v409_v18 = vpop.eup %408  ;;  %v312_v0 = vmul.f32 %v407_v16, %v305_v10 }
 0x1a3   :  { %v199_v13 = vmul.f32 0.6931472, %v409_v18  ;;  %416 = vlog2.f32 %v191_v17 }
 0x1a4   :  { %v411_v21 = vpop.eup %410  ;;  %418 = vlog2.f32 %v312_v0 }
 0x1a5   :  { %v413_v22 = vpop.eup %412  ;;  %v314_v23 = vmul.f32 %v411_v21, %v306_v20  ;;  %v202_v24 = vmul.f32 0.5, %v199_v13 }
 0x1a6   :  { %v322_v25 = vmul.f32 0.6931472, %v413_v22 }
 0x1a7   :  { %420 = vlog2.f32 %v314_v23  ;;  %v205_v29 = vmul.f32 2.0, %v202_v24 }
 0x1a8   :  { %v325_v27 = vmul.f32 0.5, %v322_v25 }
 0x1aa   :  { %v415_v28 = vpop.eup %414  ;;  %v328_v30 = vmul.f32 2.0, %v325_v27 }
 0x1ab   :  { %v195_v32 = vmul.f32 0.6931472, %v415_v28 }
 0x1ac   :  { %v331_v1 = vsub.f32 %v205_v29, %v328_v30 }
 0x1ad   :  { %v417_v33 = vpop.eup %416  ;;  %v200_v37 = vmul.f32 0.5, %v195_v32 }
 0x1ae   :  { %v419_v34 = vpop.eup %418  ;;  %v334_v35 = vadd.f32 1.0, %v331_v1  ;;  %v197_v36 = vmul.f32 0.6931472, %v417_v33 }
 0x1af   :  { %v318_v38 = vmul.f32 0.6931472, %v419_v34  ;;  %v203_v44 = vmul.f32 2.0, %v200_v37 }
 0x1b0   :  { %v337_v2 = vmax.f32 %v334_v35, 0.0  ;;  %v201_v42 = vmul.f32 0.5, %v197_v36 }
 0x1b1   :  { %v421_v39 = vpop.eup %420  ;;  %v323_v40 = vmul.f32 0.5, %v318_v38 }
 0x1b2   :  { %v352_v41 = vsel %vm349_vm13, %v337_v2, 0.0  ;;  %v320_v43 = vmul.f32 0.6931472, %v421_v39  ;;  %v204_v48 = vmul.f32 2.0, %v201_v42 }
 0x1b3   :  { %356 = vst.msk [vmem:[%s672_s3 + $0x10] sm:$0xff] %vm353_vm14, %v352_v41  ;;  %v326_v45 = vmul.f32 2.0, %v323_v40 }
 0x1b4   :  { %v324_v46 = vmul.f32 0.5, %v320_v43 }
 0x1b5   :  { %v329_v47 = vsub.f32 %v203_v44, %v326_v45 }
 0x1b6   :  { %v327_v49 = vmul.f32 2.0, %v324_v46 }
 0x1b7   :  { %v332_v5 = vadd.f32 1.0, %v329_v47 }
 0x1b8   :  { %v330_v6 = vsub.f32 %v204_v48, %v327_v49 }
 0x1b9   :  { %v335_v50 = vmax.f32 %v332_v5, 0.0 }
 0x1ba   :  { %v333_v51 = vadd.f32 1.0, %v330_v6 }
 0x1bb   :  { %354 = vst.msk [vmem:[%s672_s3] sm:$0xff] %vm353_vm14, %v335_v50 }
 0x1bc   :  { %v336_v52 = vmax.f32 %v333_v51, 0.0 }
 0x1be   :  { %355 = vst.msk [vmem:[%s672_s3 + $0x8] sm:$0xff] %vm353_vm14, %v336_v52 }
 0x1bf   :  { %361 = vsyncpa [#allocation3], 1 }
 0x1c0   :  { %362 = vsyncpa [#allocation5], 1 }

</bundles_post_ra>
